<compile_context>
chip_gen: v6e
topology: v6e:2x2x1
jax: 0.10.0
libtpu: 0.0.40
codegen_flags: <defaults>
</compile_context>

<pallas_src>
import jax
import jax.numpy as jnp
from jax.experimental import pallas as pl
from jax.experimental.pallas import tpu as pltpu


def _round_up(x, m):
    return ((x + m - 1) // m) * m


def _tile_bytes(rows, cols, itemsize):
    """VMEM footprint of a (rows, cols) buffer after (8,128) layout padding."""
    return _round_up(max(int(rows), 1), 8) * _round_up(max(int(cols), 1), 128) * itemsize


def _vmem_capacity_bytes():
    try:
        return int(pltpu.get_tpu_info().vmem_capacity_bytes)
    except Exception:
        return 64 << 20  # conservative fallback (v7x per-TensorCore VMEM)


# ---------------------------------------------------------------------------
# Pallas kernel: fused RUBi head (MLP c_1 + sigmoid mask fusion + Linear c_2)
# One grid step processes one batch tile; weights are VMEM-resident.
# ---------------------------------------------------------------------------
def _make_rubi_kernel(num_logits, mul_in_bf16):
    L = num_logits

    def kernel(*refs):
        q_ref = refs[0]                                   # native dtype [TB, Dq]
        logit_refs = refs[1:1 + L]                        # native dtype [TB, O]
        w1_ref, b1_ref, w2_ref, b2_ref, w3_ref, b3_ref = refs[1 + L:7 + L]
        rubi_refs = refs[7 + L:7 + 2 * L]                 # [TB, O] each
        qout_ref = refs[7 + 2 * L]                        # [TB, O]

        # grad_mul_const(q_emb, 0.0) -> identity in the forward pass.
        q = q_ref[...].astype(jnp.bfloat16)               # cast for MXU in-kernel

        # c_1 : relu(q @ W1 + b1) @ W2 + b2   (bf16 MXU operands, f32 accumulate)
        h = jnp.dot(q, w1_ref[...], preferred_element_type=jnp.float32)
        h = jnp.maximum(h + b1_ref[...], 0.0)
        q_pred = jnp.dot(h.astype(jnp.bfloat16), w2_ref[...],
                         preferred_element_type=jnp.float32) + b2_ref[...]

        # exact sigmoid: exp on the EUP, one f32 divide (negligible cost here).
        sig = 1.0 / (1.0 + jnp.exp(-q_pred))              # f32 [TB, O]

        # logits_rubi[l] = logits[l] * sigmoid(q_pred); multiply in bf16 only
        # when the output is bf16 (halves VALU work on v6e/v7x).
        sig_m = sig.astype(jnp.bfloat16) if mul_in_bf16 else sig
        for l in range(L):
            prod = logit_refs[l][...].astype(sig_m.dtype) * sig_m
            rubi_refs[l][...] = prod.astype(rubi_refs[l].dtype)

        # c_2 : Linear(O, O) applied to q_pred   (end_classif=True path)
        q_out = jnp.dot(q_pred.astype(jnp.bfloat16), w3_ref[...],
                        preferred_element_type=jnp.float32) + b3_ref[...]
        qout_ref[...] = q_out.astype(qout_ref.dtype)

    return kernel


# ---------------------------------------------------------------------------
# Wrapper mirroring RUBiNet.forward (given the wrapped net's outputs)
# ---------------------------------------------------------------------------
def rubi_forward(q_emb, logits_list, params, *, out_dtype=None, batch_tile=None):
    L = len(logits_list)
    B, Dq = q_emb.shape
    O = logits_list[0].shape[1]
    H = params["w1"].shape[1]

    if out_dtype is None:
        out_dtype = logits_list[0].dtype
    out_isz = jnp.dtype(out_dtype).itemsize
    q_isz = jnp.dtype(q_emb.dtype).itemsize
    lg_isz = jnp.dtype(logits_list[0].dtype).itemsize

    # ---- chip-aware VMEM budgeting -------------------------------------------------
    vmem_cap = _vmem_capacity_bytes()
    budget = int(0.8 * vmem_cap)

    # Resident weights/biases (bf16 weights, f32 biases), per pipeline buffer.
    w_bytes = (_tile_bytes(Dq, H, 2) + _tile_bytes(H, O, 2) + _tile_bytes(O, O, 2)
               + _tile_bytes(1, H, 4) + 2 * _tile_bytes(1, O, 4))
    # Only single-buffer the constant-index weight specs when double-buffering
    # would blow a meaningful fraction of VMEM (large models / v7x).
    single_buffer_weights = (2 * w_bytes > (45 * vmem_cap) // 100)
    w_buf = 1 if single_buffer_weights else 2

    def footprint(tb):
        act = (_tile_bytes(tb, Dq, q_isz)
               + L * _tile_bytes(tb, O, lg_isz)
               + (L + 1) * _tile_bytes(tb, O, out_isz))
        # f32 intermediates: h (TB,H), q_pred + sig (+ one temp) (TB,O)
        scratch = _tile_bytes(tb, H, 4) + 3 * _tile_bytes(tb, O, 4)
        return w_buf * w_bytes + 2 * act + scratch

    if batch_tile is None:
        # 512 rows on 128-MiB chips (v5e/v6e); 256 on 64-MiB chips (v7x).
        batch_tile = 512 if vmem_cap >= (96 << 20) else 256
    TB = _round_up(min(batch_tile, _round_up(B, 8)), 8)
    while TB > 8 and footprint(TB) > budget:
        TB = _round_up(max(TB // 2, 8), 8)

    B_p = _round_up(B, TB)
    grid_b = B_p // TB

    # ---- inputs: batch padding only when needed; no dtype passes on activations ----
    def pad_batch(x):
        return x if x.shape[0] == B_p else jnp.pad(x, ((0, B_p - x.shape[0]), (0, 0)))

    q_in = pad_batch(q_emb)
    logits_in = [pad_batch(lg) for lg in logits_list]

    # Weights feed the MXU -> bf16 (no-op if already bf16); biases stay f32.
    w1 = jnp.asarray(params["w1"], jnp.bfloat16)
    w2 = jnp.asarray(params["w2"], jnp.bfloat16)
    w3 = jnp.asarray(params["w3"], jnp.bfloat16)
    b1 = jnp.asarray(params["b1"], jnp.float32).reshape(1, -1)
    b2 = jnp.asarray(params["b2"], jnp.float32).reshape(1, -1)
    b3 = jnp.asarray(params["b3"], jnp.float32).reshape(1, -1)

    # Batch-tiled activations; weights use a constant block -> VMEM resident.
    def bspec(cols):
        return pl.BlockSpec((TB, cols), lambda i: (i, 0))

    w_kwargs = {"pipeline_mode": pl.Buffered(1)} if single_buffer_weights else {}

    def wspec(shape):
        return pl.BlockSpec(shape, lambda i: (0, 0), **w_kwargs)

    in_specs = (
        [bspec(Dq)]
        + [bspec(O) for _ in range(L)]
        + [wspec((Dq, H)), wspec((1, H)),
           wspec((H, O)), wspec((1, O)),
           wspec((O, O)), wspec((1, O))]
    )
    out_specs = [bspec(O) for _ in range(L + 1)]
    out_shape = tuple(jax.ShapeDtypeStruct((B_p, O), out_dtype)
                      for _ in range(L + 1))

    vmem_limit = int(min(budget, max(32 << 20, footprint(TB) + (4 << 20))))

    mul_in_bf16 = jnp.dtype(out_dtype) == jnp.dtype(jnp.bfloat16)

    outs = pl.pallas_call(
        _make_rubi_kernel(L, mul_in_bf16),
        out_shape=out_shape,
        grid_spec=pltpu.PrefetchScalarGridSpec(
            num_scalar_prefetch=0,
            grid=(grid_b,),
            in_specs=in_specs,
            out_specs=out_specs,
        ),
        compiler_params=pltpu.CompilerParams(
            dimension_semantics=("parallel",),
            vmem_limit_bytes=vmem_limit,
        ),
    )(q_in, *logits_in, w1, b1, w2, b2, w3, b3)

    rubi_p = list(outs[:L])
    qout_p = outs[L]
    if B_p != B:  # strip batch padding only if we actually padded
        rubi_p = [r[:B] for r in rubi_p]
        qout_p = qout_p[:B]

    return {
        "logits": logits_list,        # passthrough of the wrapped net's logits
        "logits_rubi": rubi_p,
        "logits_q": qout_p,
    }


# ---------------------------------------------------------------------------
# Deterministic parameter init (PyTorch-style uniform(-1/sqrt(fan_in), ...))
# ---------------------------------------------------------------------------
def init_params(key, d_q, hidden, output_size):
    ks = jax.random.split(key, 6)

    def lin(kw, kb, fan_in, fan_out):
        bound = 1.0 / jnp.sqrt(fan_in)
        w = jax.random.uniform(kw, (fan_in, fan_out), jnp.float32, -bound, bound)
        b = jax.random.uniform(kb, (1, fan_out), jnp.float32, -bound, bound)
        return w, b

    w1, b1 = lin(ks[0], ks[1], d_q, hidden)               # c_1 layer 1
    w2, b2 = lin(ks[2], ks[3], hidden, output_size)       # c_1 layer 2
    w3, b3 = lin(ks[4], ks[5], output_size, output_size)  # c_2
    return {"w1": w1, "b1": b1, "w2": w2, "b2": b2, "w3": w3, "b3": b3}


def rubi_reference(q_emb, logits_list, p):
    """Pure-JAX reference mirroring the kernel's bf16 MXU operand casts."""
    bf = jnp.bfloat16
    h = jnp.dot(q_emb.astype(bf), jnp.asarray(p["w1"], bf),
                preferred_element_type=jnp.float32) + p["b1"].reshape(1, -1)
    h = jnp.maximum(h, 0.0)
    q_pred = jnp.dot(h.astype(bf), jnp.asarray(p["w2"], bf),
                     preferred_element_type=jnp.float32) + p["b2"].reshape(1, -1)
    sig = jax.nn.sigmoid(q_pred)
    rubi = [lg * sig for lg in logits_list]
    q_out = jnp.dot(q_pred.astype(bf), jnp.asarray(p["w3"], bf),
                    preferred_element_type=jnp.float32) + p["b3"].reshape(1, -1)
    return rubi, q_out


if __name__ == "__main__":
    # Small shapes consistent with the module's forward:
    B = 2            # batch
    D_Q = 32         # q_emb dim (wrapped net's question embedding size)
    HIDDEN = 64      # MLP c_1 hidden dim (from `classif` config)
    OUT = 16         # output_size (number of answer classes)
    L = 2            # number of logits tensors in the list returned by the net

    key = jax.random.PRNGKey(0)
    k_q, k_l, k_p = jax.random.split(key, 3)

    q_emb = jax.random.normal(k_q, (B, D_Q), jnp.float32)
    logits_stack = jax.random.normal(k_l, (L, B, OUT), jnp.float32)
    logits_list = [logits_stack[i] for i in range(L)]

    params = init_params(k_p, D_Q, HIDDEN, OUT)

    out = rubi_forward(q_emb, logits_list, params)
    jax.block_until_ready(out["logits_q"])
    for r in out["logits_rubi"]:
        jax.block_until_ready(r)

    # sanity check against pure-JAX reference
    ref_rubi, ref_q = rubi_reference(q_emb, logits_list, params)
    for got, want in zip(out["logits_rubi"], ref_rubi):
        assert jnp.allclose(got, want, atol=1e-2, rtol=1e-2), "logits_rubi mismatch"
    assert jnp.allclose(out["logits_q"], ref_q, atol=1e-2, rtol=1e-2), "logits_q mismatch"

    print("KERNEL_OK")
</pallas_src>

<mosaic_0001>
module attributes {stable_mosaic.version = 11 : i64} {
  func.func @kernel(%arg0: i32, %arg1: memref<8x32xf32, #tpu.memory_space<vmem>>, %arg2: memref<8x16xf32, #tpu.memory_space<vmem>>, %arg3: memref<8x16xf32, #tpu.memory_space<vmem>>, %arg4: memref<32x64xbf16, #tpu.memory_space<vmem>>, %arg5: memref<1x64xf32, #tpu.memory_space<vmem>>, %arg6: memref<64x16xbf16, #tpu.memory_space<vmem>>, %arg7: memref<1x16xf32, #tpu.memory_space<vmem>>, %arg8: memref<16x16xbf16, #tpu.memory_space<vmem>>, %arg9: memref<1x16xf32, #tpu.memory_space<vmem>>, %arg10: memref<8x16xf32, #tpu.memory_space<vmem>>, %arg11: memref<8x16xf32, #tpu.memory_space<vmem>>, %arg12: memref<8x16xf32, #tpu.memory_space<vmem>>) attributes {dimension_semantics = [#tpu.dimension_semantics<parallel>], iteration_bounds = array<i64: 1>, scalar_prefetch = 0 : i64, scratch_operands = 0 : i64, tpu.core_type = #tpu.core_type<tc>, window_params = [{transform_indices = @transform_0, window_bounds = array<i64: 8, 32>}, {transform_indices = @transform_1, window_bounds = array<i64: 8, 16>}, {transform_indices = @transform_2, window_bounds = array<i64: 8, 16>}, {pipeline_mode = #tpu.pipeline_mode<synchronous>, transform_indices = @transform_3, window_bounds = array<i64: 32, 64>}, {pipeline_mode = #tpu.pipeline_mode<synchronous>, transform_indices = @transform_4, window_bounds = array<i64: 1, 64>}, {pipeline_mode = #tpu.pipeline_mode<synchronous>, transform_indices = @transform_5, window_bounds = array<i64: 64, 16>}, {pipeline_mode = #tpu.pipeline_mode<synchronous>, transform_indices = @transform_6, window_bounds = array<i64: 1, 16>}, {pipeline_mode = #tpu.pipeline_mode<synchronous>, transform_indices = @transform_7, window_bounds = array<i64: 16, 16>}, {pipeline_mode = #tpu.pipeline_mode<synchronous>, transform_indices = @transform_8, window_bounds = array<i64: 1, 16>}, {transform_indices = @transform_9, window_bounds = array<i64: 8, 16>}, {transform_indices = @transform_10, window_bounds = array<i64: 8, 16>}, {transform_indices = @transform_11, window_bounds = array<i64: 8, 16>}]} {
    %c0 = arith.constant 0 : index
    %c0_0 = arith.constant 0 : index
    %0 = vector.load %arg1[%c0, %c0_0] : memref<8x32xf32, #tpu.memory_space<vmem>>, vector<8x32xf32>
    %1 = arith.truncf %0 : vector<8x32xf32> to vector<8x32xbf16>
    %c0_1 = arith.constant 0 : index
    %c0_2 = arith.constant 0 : index
    %2 = vector.load %arg4[%c0_1, %c0_2] : memref<32x64xbf16, #tpu.memory_space<vmem>>, vector<32x64xbf16>
    %cst = arith.constant dense<0.000000e+00> : vector<8x64xf32>
    %3 = tpu.matmul %1, %2, %cst {dimension_numbers = #tpu.dot_dimension_numbers<[1], [0], [0], [1], [0, 0, 1, 1], [], []>} : vector<8x32xbf16>, vector<32x64xbf16>, vector<8x64xf32> -> vector<8x64xf32>
    %c0_3 = arith.constant 0 : index
    %c0_4 = arith.constant 0 : index
    %4 = vector.load %arg5[%c0_3, %c0_4] : memref<1x64xf32, #tpu.memory_space<vmem>>, vector<1x64xf32>
    %5 = vector.broadcast %4 : vector<1x64xf32> to vector<8x64xf32>
    %6 = arith.addf %3, %5 : vector<8x64xf32>
    %cst_5 = arith.constant 0.000000e+00 : f32
    %7 = vector.broadcast %cst_5 : f32 to vector<8x64xf32>
    %8 = arith.maximumf %6, %7 : vector<8x64xf32>
    %9 = arith.truncf %8 : vector<8x64xf32> to vector<8x64xbf16>
    %c0_6 = arith.constant 0 : index
    %c0_7 = arith.constant 0 : index
    %10 = vector.load %arg6[%c0_6, %c0_7] : memref<64x16xbf16, #tpu.memory_space<vmem>>, vector<64x16xbf16>
    %cst_8 = arith.constant dense<0.000000e+00> : vector<8x16xf32>
    %11 = tpu.matmul %9, %10, %cst_8 {dimension_numbers = #tpu.dot_dimension_numbers<[1], [0], [0], [1], [0, 0, 1, 1], [], []>} : vector<8x64xbf16>, vector<64x16xbf16>, vector<8x16xf32> -> vector<8x16xf32>
    %c0_9 = arith.constant 0 : index
    %c0_10 = arith.constant 0 : index
    %12 = vector.load %arg7[%c0_9, %c0_10] : memref<1x16xf32, #tpu.memory_space<vmem>>, vector<1x16xf32>
    %13 = vector.broadcast %12 : vector<1x16xf32> to vector<8x16xf32>
    %14 = arith.addf %11, %13 : vector<8x16xf32>
    %cst_11 = arith.constant 0.000000e+00 : f32
    %15 = vector.broadcast %cst_11 : f32 to vector<8x16xf32>
    %16 = arith.subf %15, %14 : vector<8x16xf32>
    %17 = math.exp %16 : vector<8x16xf32>
    %cst_12 = arith.constant 1.000000e+00 : f32
    %18 = vector.broadcast %cst_12 : f32 to vector<8x16xf32>
    %19 = arith.addf %18, %17 : vector<8x16xf32>
    %cst_13 = arith.constant 1.000000e+00 : f32
    %20 = vector.broadcast %cst_13 : f32 to vector<8x16xf32>
    %21 = arith.divf %20, %19 : vector<8x16xf32>
    %c0_14 = arith.constant 0 : index
    %c0_15 = arith.constant 0 : index
    %22 = vector.load %arg2[%c0_14, %c0_15] : memref<8x16xf32, #tpu.memory_space<vmem>>, vector<8x16xf32>
    %23 = arith.mulf %22, %21 : vector<8x16xf32>
    %c0_16 = arith.constant 0 : index
    %c0_17 = arith.constant 0 : index
    %24 = vector.load %arg10[%c0_16, %c0_17] : memref<8x16xf32, #tpu.memory_space<vmem>>, vector<8x16xf32>
    tpu.vector_store %arg10[%c0_16, %c0_17], %23 {strides = array<i32>} : memref<8x16xf32, #tpu.memory_space<vmem>>, vector<8x16xf32>,
    %c0_18 = arith.constant 0 : index
    %c0_19 = arith.constant 0 : index
    %25 = vector.load %arg3[%c0_18, %c0_19] : memref<8x16xf32, #tpu.memory_space<vmem>>, vector<8x16xf32>
    %26 = arith.mulf %25, %21 : vector<8x16xf32>
    %c0_20 = arith.constant 0 : index
    %c0_21 = arith.constant 0 : index
    %27 = vector.load %arg11[%c0_20, %c0_21] : memref<8x16xf32, #tpu.memory_space<vmem>>, vector<8x16xf32>
    tpu.vector_store %arg11[%c0_20, %c0_21], %26 {strides = array<i32>} : memref<8x16xf32, #tpu.memory_space<vmem>>, vector<8x16xf32>,
    %28 = arith.truncf %14 : vector<8x16xf32> to vector<8x16xbf16>
    %c0_22 = arith.constant 0 : index
    %c0_23 = arith.constant 0 : index
    %29 = vector.load %arg8[%c0_22, %c0_23] : memref<16x16xbf16, #tpu.memory_space<vmem>>, vector<16x16xbf16>
    %cst_24 = arith.constant dense<0.000000e+00> : vector<8x16xf32>
    %30 = tpu.matmul %28, %29, %cst_24 {dimension_numbers = #tpu.dot_dimension_numbers<[1], [0], [0], [1], [0, 0, 1, 1], [], []>} : vector<8x16xbf16>, vector<16x16xbf16>, vector<8x16xf32> -> vector<8x16xf32>
    %c0_25 = arith.constant 0 : index
    %c0_26 = arith.constant 0 : index
    %31 = vector.load %arg9[%c0_25, %c0_26] : memref<1x16xf32, #tpu.memory_space<vmem>>, vector<1x16xf32>
    %32 = vector.broadcast %31 : vector<1x16xf32> to vector<8x16xf32>
    %33 = arith.addf %30, %32 : vector<8x16xf32>
    %c0_27 = arith.constant 0 : index
    %c0_28 = arith.constant 0 : index
    %34 = vector.load %arg12[%c0_27, %c0_28] : memref<8x16xf32, #tpu.memory_space<vmem>>, vector<8x16xf32>
    tpu.vector_store %arg12[%c0_27, %c0_28], %33 {strides = array<i32>} : memref<8x16xf32, #tpu.memory_space<vmem>>, vector<8x16xf32>,
    return
  }
  func.func @transform_0(%arg0: i32) -> (i32, i32) {
    %c0_i32 = arith.constant 0 : i32
    %c0_i32_0 = arith.constant 0 : i32
    return %arg0, %c0_i32 : i32, i32
  }
  func.func @transform_1(%arg0: i32) -> (i32, i32) {
    %c0_i32 = arith.constant 0 : i32
    %c0_i32_0 = arith.constant 0 : i32
    return %arg0, %c0_i32 : i32, i32
  }
  func.func @transform_2(%arg0: i32) -> (i32, i32) {
    %c0_i32 = arith.constant 0 : i32
    %c0_i32_0 = arith.constant 0 : i32
    return %arg0, %c0_i32 : i32, i32
  }
  func.func @transform_3(%arg0: i32) -> (i32, i32) {
    %c0_i32 = arith.constant 0 : i32
    %c0_i32_0 = arith.constant 0 : i32
    %c0_i32_1 = arith.constant 0 : i32
    return %c0_i32, %c0_i32_0 : i32, i32
  }
  func.func @transform_4(%arg0: i32) -> (i32, i32) {
    %c0_i32 = arith.constant 0 : i32
    %c0_i32_0 = arith.constant 0 : i32
    %c0_i32_1 = arith.constant 0 : i32
    return %c0_i32, %c0_i32_0 : i32, i32
  }
  func.func @transform_5(%arg0: i32) -> (i32, i32) {
    %c0_i32 = arith.constant 0 : i32
    %c0_i32_0 = arith.constant 0 : i32
    %c0_i32_1 = arith.constant 0 : i32
    return %c0_i32, %c0_i32_0 : i32, i32
  }
  func.func @transform_6(%arg0: i32) -> (i32, i32) {
    %c0_i32 = arith.constant 0 : i32
    %c0_i32_0 = arith.constant 0 : i32
    %c0_i32_1 = arith.constant 0 : i32
    return %c0_i32, %c0_i32_0 : i32, i32
  }
  func.func @transform_7(%arg0: i32) -> (i32, i32) {
    %c0_i32 = arith.constant 0 : i32
    %c0_i32_0 = arith.constant 0 : i32
    %c0_i32_1 = arith.constant 0 : i32
    return %c0_i32, %c0_i32_0 : i32, i32
  }
  func.func @transform_8(%arg0: i32) -> (i32, i32) {
    %c0_i32 = arith.constant 0 : i32
    %c0_i32_0 = arith.constant 0 : i32
    %c0_i32_1 = arith.constant 0 : i32
    return %c0_i32, %c0_i32_0 : i32, i32
  }
  func.func @transform_9(%arg0: i32) -> (i32, i32) {
    %c0_i32 = arith.constant 0 : i32
    %c0_i32_0 = arith.constant 0 : i32
    return %arg0, %c0_i32 : i32, i32
  }
  func.func @transform_10(%arg0: i32) -> (i32, i32) {
    %c0_i32 = arith.constant 0 : i32
    %c0_i32_0 = arith.constant 0 : i32
    return %arg0, %c0_i32 : i32, i32
  }
  func.func @transform_11(%arg0: i32) -> (i32, i32) {
    %c0_i32 = arith.constant 0 : i32
    %c0_i32_0 = arith.constant 0 : i32
    return %arg0, %c0_i32 : i32, i32
  }
}

</mosaic_0001>

<bundles_post_ra>
// kernel: tpu_custom_call.1
= control target key start
LH: loop header
LB: loop body
LE: loop exit
PB: predicated region body
PF: predicated region fallthrough
CT: control target
= control target key end

     0   :  { %17 = vsyncpa [#allocation3], 0  ;;  %s598_s0 = inlined_call_operand.vmem [shape: f32[8,32], index: 0, kind: input, shape index: {}]   ;;  %s599_s1 = inlined_call_operand.vmem [shape: f32[8,16], index: 1, kind: input, shape index: {}]   ;;  %s600_s2 = inlined_call_operand.vmem [shape: f32[8,16], index: 2, kind: input, shape index: {}]   ;;  %s601_s3 = inlined_call_operand.vmem [shape: bf16[32,64], index: 3, kind: input, shape index: {}]   ;;  %s602_s4 = inlined_call_operand.vmem [shape: f32[1,64], index: 4, kind: input, shape index: {}]   ;;  %s603_s5 = inlined_call_operand.vmem [shape: bf16[64,16], index: 5, kind: input, shape index: {}]   ;;  %s604_s6 = inlined_call_operand.vmem [shape: f32[1,16], index: 6, kind: input, shape index: {}]   ;;  %s605_s7 = inlined_call_operand.hbm [shape: bf16[16,16], index: 7, kind: input, shape index: {}]   ;;  %s606_s8 = inlined_call_operand.vmem [shape: f32[1,16], index: 8, kind: input, shape index: {}]   ;;  %s607_s9 = inlined_call_operand.hbm [shape: f32[8,16], index: 9, kind: output, shape index: {0}]   ;;  %s608_s10 = inlined_call_operand.hbm [shape: f32[8,16], index: 10, kind: output, shape index: {1}]   ;;  %s609_s11 = inlined_call_operand.hbm [shape: f32[8,16], index: 11, kind: output, shape index: {2}]  }
   0x1   :  { %18 = vsyncpa [#allocation4], 0 }
   0x2   :  { %19 = vsyncpa [#allocation7], 0  ;;  %s475_s17 = smov [#allocation2]  }
   0x3   :  { %s39_s18 = sshll.u32 %s475_s17, 4  ;;  %s40_s18 = int_to_ptr.vmem [resolvable:$true] %s39_s18 }
   0x4   :  { %s397_s19 = scalar_lea.vmem %s40_s18, 128  ;;  %p402_p1 = scmp.lt.s32.totalorder %s40_s18, %s40_s18 }
   0x5   :  { %p398_p0 = scmp.ne.s32.totalorder %s40_s18, %s397_s19  ;;  %p403_p2 = scmp.lt.s32.totalorder %s397_s19, %s397_s19 }
   0x7   :  { %p404_p3 = por %p403_p2, %p402_p1 }
   0x9   :  { %p405_p4 = pnand %p404_p3, %p398_p0 }
   0xb   :  { %408 = shalt.err (!%p405_p4)
}
   0xc   :  { %s476_s20 = smov 64   ;;  %s477_s21 = smov 4  }
   0xd   :  { %45 = dma.hbm_to_vmem [thread:$0]  %s605_s7, 128, %s40_s18, [#allocation3], %s476_s20, %s476_s20, %s477_s21  }
   0xe   :  { %469 = dma.done.wait [#allocation3], 128  }
   0xf   :  { %470 = vsyncadd [#allocation3], 4294967168  ;;  %v478_v0 = vmov 0.0   ;;  %vm479_vm0 = vmmov 0   ;;  %v378_v1 = vld [vmem:[%s601_s3 + $0x8] sm:$0xff]   ;;  %v379_v2 = vld [vmem:[%s601_s3] sm:$0xff]  }
  0x10   :  { %344 = vmatprep.subr.bf16.mxu0 %v478_v0  ;;  %348 = vmatprep.mubr.msk.bf16.mxu0 %vm479_vm0, %v478_v0  ;;  %v52_v3 = vld [vmem:[%s598_s0] sm:$0xff]  ;;  %v380_v4 = vld [vmem:[%s603_s5 + $0x18] sm:$0xff]   ;;  %v381_v5 = vld [vmem:[%s603_s5 + $0x10] sm:$0xff]   ;;  %vm77_vm1 = vcmask 261120   ;;  %vm162_vm2 = vcmask 523264   ;;  %vm214_vm3 = vcmask 130048  }
  0x11   :  { %352 = vmatprep.subr.bf16.mxu1 %v478_v0  ;;  %360 = vmatprep.mubr.msk.bf16.mxu1 %vm479_vm0, %v478_v0  ;;  %v53_v6 = vpack.c.bf16 %v52_v3, %v52_v3  ;;  %v382_v7 = vld [vmem:[%s603_s5 + $0x8] sm:$0xff]   ;;  %v383_v8 = vld [vmem:[%s603_s5] sm:$0xff]   ;;  %s480_s21 = smov [#allocation6]   ;;  %s481_s23 = smov [#allocation5]  }
  0x12   :  { %345 = vmatpush3.bf16.msra.mxu0 %v378_v1  ;;  %353 = vmatpush3.bf16.msra.mxu1 %v380_v4  ;;  %v384_v9 = vld [vmem:[#allocation2] sm:$0xff]   ;;  %s295_s22 = sshll.u32 %s480_s21, 4  ;;  %s285_s24 = sshll.u32 %s481_s23, 4  ;;  %s296_s22 = int_to_ptr.vmem [resolvable:$true] %s295_s22  ;;  %s286_s24 = int_to_ptr.vmem [resolvable:$true] %s285_s24 }
  0x13   :  { %346 = vmatprep.subr.bf16.mxu0 %v478_v0  ;;  %354 = vmatprep.subr.bf16.mxu1 %v478_v0  ;;  %v321_v10 = vld [vmem:[%s602_s4] ss:$0 sm:$0xff]  ;;  %s409_s25 = scalar_lea.vmem %s296_s22, 128  ;;  %p414_p6 = scmp.lt.s32.totalorder %s296_s22, %s296_s22 }
  0x14   :  { %v325_v18 = vld [vmem:[%s604_s6] ss:$0 sm:$0xff]  ;;  %p410_p5 = scmp.ne.s32.totalorder %s296_s22, %s409_s25  ;;  %p415_p7 = scmp.lt.s32.totalorder %s409_s25, %s409_s25 }
  0x15   :  { %v216_v29 = vld [vmem:[%s600_s2] sm:$0xff] }
  0x16   :  { %347 = vmatpush3.bf16.msra.mxu0 %v379_v2  ;;  %355 = vmatpush3.bf16.msra.mxu1 %v381_v5  ;;  %v212_v30 = vld [vmem:[%s599_s1] sm:$0xff]  ;;  %p416_p8 = por %p415_p7, %p414_p6 }
  0x17   :  { %364 = vmatprep.subr.bf16.mxu0 %v478_v0  ;;  %356 = vmatprep.subr.bf16.mxu1 %v478_v0 }
  0x18   :  { %p417_p9 = pnand %p416_p8, %p410_p5 }
  0x19   :  { %349 = vmatmul.mubr.msk.bf16.vlgmr.msra.gmra.mxu0 %vm77_vm1, %v53_v6 }
  0x1a   :  { %366 = vmatprep.mubr.msk.bf16.mxu0 %vm479_vm0, %v478_v0  ;;  %357 = vmatpush3.bf16.msra.mxu1 %v382_v7 }
  0x1b   :  { %358 = vmatprep.subr.bf16.mxu1 %v478_v0  ;;  %365 = vmatpush3.bf16.msra.mxu0 %v384_v9 }
  0x1e   :  { %359 = vmatpush3.bf16.msra.mxu1 %v383_v8 }
  0xd9   :  { %v115_v11 = vpop.f32.mrf.mxu0 }
  0xda   :  { %v116_v12 = vadd.f32 %v321_v10, %v115_v11 }
  0xdb   :  { %v350_v13 = vpop.f32.mrf.mxu0 }
  0xdc   :  { %v121_v14 = vmax.f32 %v116_v12, 0.0 }
  0xdd   :  { %v118_v15 = vpop.f32.mrf.mxu0 }
  0xde   :  { %v122_v16 = vpack.c.bf16 %v121_v14, %v121_v14 }
  0xdf   :  { %v351_v17 = vpop.f32.mrf.mxu0 }
  0xe0   :  { %361 = vmatmul.mubr.msk.bf16.vlgmr.msra.gmra.mxu1 %vm162_vm2, %v122_v16 }
 0x1a0   :  { %v200_v19 = vpop.f32.mrf.mxu1 }
 0x1a1   :  { %v201_v20 = vadd.f32 %v325_v18, %v200_v19 }
 0x1a2   :  { %v362_v21 = vpop.f32.mrf.mxu1 }
 0x1a3   :  { %v206_v22 = vsub.f32 0.0, %v201_v20  ;;  %v219_v23 = vpack.c.bf16 %v201_v20, %v201_v20 }
 0x1a4   :  { %v203_v24 = vpop.f32.mrf.mxu1 }
 0x1a5   :  { %v207_v25 = vmul.f32 1.442695, %v206_v22  ;;  %367 = vmatmul.mubr.msk.bf16.vlgmr.msra.gmra.mxu0 %vm214_vm3, %v219_v23 }
 0x1a6   :  { %v363_v26 = vpop.f32.mrf.mxu1 }
 0x1a7   :  { %385 = vpow2.f32 %v207_v25 }
 0x1b4   :  { %v386_v27 = vpop.eup %385 }
 0x1b5   :  { %v209_v28 = vadd.f32 1.0, %v386_v27 }
 0x1b7   :  { %387 = vrcp.f32 %v209_v28 }
 0x1c4   :  { %v388_v31 = vpop.eup %387 }
 0x1c5   :  { %v217_v32 = vmul.f32 %v388_v31, %v216_v29  ;;  %v213_v33 = vmul.f32 %v388_v31, %v212_v30 }
 0x1c7   :  { %218 = vst.msk [vmem:[#allocation6] sm:$0xff] %vm214_vm3, %v217_v32  ;;  %215 = vst.msk [vmem:[#allocation5] sm:$0xff] %vm214_vm3, %v213_v33 }
 0x1c8   :  { %420 = shalt.err (!%p417_p9)
}
 0x1c9   :  { %298 = dma.vmem_to_hbm [thread:$0]  %s296_s22, 128, %s608_s10, [#allocation7]  }
 0x1ca   :  { %s429_s26 = scalar_lea.vmem %s286_s24, 128  ;;  %p434_p11 = scmp.lt.s32.totalorder %s286_s24, %s286_s24 }
 0x1cb   :  { %p430_p10 = scmp.ne.s32.totalorder %s286_s24, %s429_s26  ;;  %p435_p12 = scmp.lt.s32.totalorder %s429_s26, %s429_s26 }
 0x1cd   :  { %p436_p13 = por %p435_p12, %p434_p11 }
 0x1cf   :  { %p437_p0 = pnand %p436_p13, %p430_p10 }
 0x1d1   :  { %440 = shalt.err (!%p437_p0)
}
 0x1d2   :  { %288 = dma.vmem_to_hbm [thread:$0]  %s286_s24, 128, %s607_s9, [#allocation4]   ;;  %v331_v34 = vld [vmem:[%s606_s8] ss:$0 sm:$0xff] }
 0x1d3   :  { %s482_s30 = smov [#allocation8]  }
 0x1d4   :  { %s305_s12 = sshll.u32 %s482_s30, 4  ;;  %s306_s12 = int_to_ptr.vmem [resolvable:$true] %s305_s12 }
 0x1d5   :  { %s449_s10 = scalar_lea.vmem %s306_s12, 128  ;;  %p454_p2 = scmp.lt.s32.totalorder %s306_s12, %s306_s12 }
 0x1d6   :  { %p450_p1 = scmp.ne.s32.totalorder %s306_s12, %s449_s10  ;;  %p455_p3 = scmp.lt.s32.totalorder %s449_s10, %s449_s10 }
 0x1d8   :  { %p456_p4 = por %p455_p3, %p454_p2 }
 0x1da   :  { %p457_p5 = pnand %p456_p4, %p450_p1 }
 0x265   :  { %v272_v35 = vpop.f32.mrf.mxu0 }
 0x266   :  { %v273_v36 = vadd.f32 %v331_v34, %v272_v35 }
 0x267   :  { %v368_v37 = vpop.f32.mrf.mxu0 }
 0x268   :  { %278 = vst.msk [vmem:[#allocation8] sm:$0xff] %vm214_vm3, %v273_v36 }
 0x269   :  { %v275_v38 = vpop.f32.mrf.mxu0 }
 0x26a   :  { %460 = shalt.err (!%p457_p5)
}
 0x26b   :  { %308 = dma.vmem_to_hbm [thread:$0]  %s306_s12, 128, %s609_s11, [#allocation7]   ;;  %v369_v39 = vpop.f32.mrf.mxu0 }
 0x26c   :  { %471 = dma.done.wait [#allocation4], 128  }
 0x26d   :  { %472 = vsyncadd [#allocation4], 4294967168 }
 0x26e   :  { %473 = dma.done.wait [#allocation7], 256  }
 0x26f   :  { %474 = vsyncadd [#allocation7], 4294967040 }
 0x270   :  { %318 = vsyncpa [#allocation3], 1 }
 0x271   :  { %319 = vsyncpa [#allocation4], 1 }
 0x272   :  { %320 = vsyncpa [#allocation7], 1 }

</bundles_post_ra>
